<compile_context>
chip_gen: v5e
topology: v5e:2x2
jax: 0.10.0
libtpu: 0.0.40
codegen_flags: <defaults>
</compile_context>

<pallas_src>
import functools

import jax
import jax.numpy as jnp
from jax.experimental import pallas as pl
from jax.experimental.pallas import tpu as pltpu

LANE = 128


def _round_up(n, m):
    return ((n + m - 1) // m) * m


def _choose_tb(batch, block_rows):
    """Pick a batch tile: even split, <= block_rows, >=2 steps for big B."""
    n_steps = max(1, pl.cdiv(batch, block_rows))
    if batch >= 256:            # v7x has 2 TensorCores; keep both busy.
        n_steps = max(n_steps, 2)
    tb = pl.cdiv(batch, n_steps)
    align = 16 if tb >= 16 else 8
    return _round_up(tb, align)


def actorlog_kernel(x_ref, wt_ref, w1_ref, w2_ref, w3_ref, vec_ref, mean_ref,
                    *, feat, hid):
    # x_ref: (TB, R) f32 (cast to bf16 here).  Weights bf16 (resident).
    # vec_ref: (8, 128) f32 bias/LN slab.  mean_ref: (TB, 128) bf16.
    x = x_ref[...].astype(jnp.bfloat16)

    bt   = vec_ref[0:1, 0:feat]
    ln_g = vec_ref[1:2, 0:feat]
    ln_b = vec_ref[2:3, 0:feat]
    b1   = vec_ref[3:4, 0:hid]
    b2   = vec_ref[4:5, 0:hid]
    b3   = vec_ref[5:6, :]          # (1, 128), zero-padded past num_actions

    # --- trunk: Linear -> LayerNorm -> ReLU (element-wise math in f32) ---
    h = jnp.dot(x, wt_ref[...], preferred_element_type=jnp.float32) + bt
    mu = jnp.mean(h, axis=-1, keepdims=True)
    var = jnp.mean(jnp.square(h - mu), axis=-1, keepdims=True)
    h = (h - mu) * jax.lax.rsqrt(var + 1e-5)
    h = h * ln_g + ln_b
    h = jnp.maximum(h, 0.0)

    # --- actor MLP: Linear+ReLU, Linear+ReLU, Linear (bf16 MXU, f32 acc) ---
    h = jnp.maximum(
        jnp.dot(h.astype(jnp.bfloat16), w1_ref[...],
                preferred_element_type=jnp.float32) + b1, 0.0)
    h = jnp.maximum(
        jnp.dot(h.astype(jnp.bfloat16), w2_ref[...],
                preferred_element_type=jnp.float32) + b2, 0.0)
    out = jnp.dot(h.astype(jnp.bfloat16), w3_ref[...],
                  preferred_element_type=jnp.float32) + b3

    # Lane-dense (TB, 128) bf16 store; padded columns are exactly tanh(0) = 0.
    mean_ref[...] = jnp.tanh(out).astype(mean_ref.dtype)


def pack_params(params):
    """One-time packing of parameters (hoisted out of the per-call path)."""
    repr_dim, feat = params["wt"].shape
    hid = params["w1"].shape[1]
    act = params["w3"].shape[1]

    wt = params["wt"].astype(jnp.bfloat16)
    w1 = params["w1"].astype(jnp.bfloat16)
    w2 = params["w2"].astype(jnp.bfloat16)
    # W3 padded to 128 output lanes (zeros beyond num_actions).
    w3 = jnp.zeros((hid, LANE), jnp.bfloat16).at[:, :act].set(
        params["w3"].astype(jnp.bfloat16))

    # Pack all small (1, n) vectors into one (8, 128) f32 slab.
    vec = jnp.zeros((8, LANE), jnp.float32)
    vec = vec.at[0, :feat].set(params["bt"].reshape(-1))
    vec = vec.at[1, :feat].set(params["ln_g"].reshape(-1))
    vec = vec.at[2, :feat].set(params["ln_b"].reshape(-1))
    vec = vec.at[3, :hid].set(params["b1"].reshape(-1))
    vec = vec.at[4, :hid].set(params["b2"].reshape(-1))
    vec = vec.at[5, :act].set(params["b3"].reshape(-1))

    # std head is data-independent: precompute exp(log_std) once.
    std_row = jnp.exp(params["log_std"]).reshape(1, act).astype(jnp.float32)

    return {"wt": wt, "w1": w1, "w2": w2, "w3": w3, "vec": vec,
            "std_row": std_row,
            "repr": repr_dim, "feat": feat, "hid": hid, "act": act}


def actorlog_forward(x, packed, *, block_rows=2048):
    B, R = x.shape
    FEAT, HID, A = packed["feat"], packed["hid"], packed["act"]

    TB = _choose_tb(B, block_rows)
    grid = pl.cdiv(B, TB)          # ragged tail: Pallas clips the last block

    kernel = functools.partial(actorlog_kernel, feat=FEAT, hid=HID)

    mean_full = pl.pallas_call(
        kernel,
        out_shape=jax.ShapeDtypeStruct((B, LANE), jnp.bfloat16),
        grid=(grid,),
        in_specs=[
            pl.BlockSpec((TB, R), lambda i: (i, 0)),        # x: batch-tiled
            pl.BlockSpec((R, FEAT), lambda i: (0, 0)),      # weights resident
            pl.BlockSpec((FEAT, HID), lambda i: (0, 0)),
            pl.BlockSpec((HID, HID), lambda i: (0, 0)),
            pl.BlockSpec((HID, LANE), lambda i: (0, 0)),
            pl.BlockSpec((8, LANE), lambda i: (0, 0)),      # bias/LN slab
        ],
        out_specs=pl.BlockSpec((TB, LANE), lambda i: (i, 0)),
        compiler_params=pltpu.CompilerParams(
            dimension_semantics=("parallel",)),
    )(x, packed["wt"], packed["w1"], packed["w2"], packed["w3"], packed["vec"])

    mean = mean_full[:, :A].astype(jnp.float32)
    std = jnp.broadcast_to(packed["std_row"], (B, A))
    return mean, std


def actorlog_reference(x, params):
    # Pure-JAX f32 reference of the PyTorch forward (for a tolerance check).
    h = x @ params["wt"] + params["bt"]
    mu = jnp.mean(h, axis=-1, keepdims=True)
    var = jnp.mean(jnp.square(h - mu), axis=-1, keepdims=True)
    h = (h - mu) * jax.lax.rsqrt(var + 1e-5)
    h = jnp.maximum(h * params["ln_g"] + params["ln_b"], 0.0)
    h = jnp.maximum(h @ params["w1"] + params["b1"], 0.0)
    h = jnp.maximum(h @ params["w2"] + params["b2"], 0.0)
    out = h @ params["w3"] + params["b3"]
    mean = jnp.tanh(out)
    std = jnp.broadcast_to(jnp.exp(params["log_std"]), mean.shape)
    return mean, std


def orthogonal(key, in_dim, out_dim, gain=1.0):
    # Deterministic orthogonal-style init (mirrors nn.init.orthogonal_).
    a = jax.random.normal(key, (max(in_dim, out_dim), min(in_dim, out_dim)),
                          dtype=jnp.float32)
    q, _ = jnp.linalg.qr(a)
    q = q[:in_dim, :out_dim] if in_dim >= out_dim else q.T[:in_dim, :out_dim]
    return gain * q.astype(jnp.float32)


def init_params(key, repr_dim, feature_dim, hidden_dim, num_actions):
    ks = jax.random.split(key, 4)
    return {
        # trunk Linear (stored (in, out)) + LayerNorm affine
        "wt": orthogonal(ks[0], repr_dim, feature_dim),
        "bt": jnp.zeros((1, feature_dim), jnp.float32),
        "ln_g": jnp.ones((1, feature_dim), jnp.float32),
        "ln_b": jnp.zeros((1, feature_dim), jnp.float32),
        # actor MLP (depth=2): hidden, hidden, output (last_gain=0.01)
        "w1": orthogonal(ks[1], feature_dim, hidden_dim),
        "b1": jnp.zeros((1, hidden_dim), jnp.float32),
        "w2": orthogonal(ks[2], hidden_dim, hidden_dim),
        "b2": jnp.zeros((1, hidden_dim), jnp.float32),
        "w3": orthogonal(ks[3], hidden_dim, num_actions, gain=0.01),
        "b3": jnp.zeros((1, num_actions), jnp.float32),
        # log_std parameter initialized to zeros (1, num_actions)
        "log_std": jnp.zeros((1, num_actions), jnp.float32),
    }


if __name__ == "__main__":
    REPR, FEAT, HID, ACT = 32, 32, 32, 4
    key = jax.random.PRNGKey(0)
    kx, kp = jax.random.split(key)
    params = init_params(kp, REPR, FEAT, HID, ACT)
    packed = pack_params(params)   # one-time parameter packing

    # Small test (exact tile fit, single grid step).
    B = 8
    x = jax.random.normal(kx, (B, REPR), dtype=jnp.float32)
    mean, std = actorlog_forward(x, packed)
    jax.block_until_ready((mean, std))
    mean_ref, std_ref = actorlog_reference(x, params)
    assert mean.shape == (B, ACT) and std.shape == (B, ACT)
    assert bool(jnp.all(jnp.abs(mean) <= 1.0))            # tanh-bounded
    assert bool(jnp.allclose(std, std_ref))               # exp(0) = 1
    assert bool(jnp.max(jnp.abs(mean - mean_ref)) < 3e-2)  # bf16 tolerance

    # Ragged-batch test (2 grid steps, clipped partial last block).
    B2 = 300
    x2 = jax.random.normal(jax.random.PRNGKey(1), (B2, REPR),
                           dtype=jnp.float32)
    mean2, std2 = actorlog_forward(x2, packed)
    jax.block_until_ready((mean2, std2))
    mean2_ref, std2_ref = actorlog_reference(x2, params)
    assert mean2.shape == (B2, ACT) and std2.shape == (B2, ACT)
    assert bool(jnp.allclose(std2, std2_ref))
    assert bool(jnp.max(jnp.abs(mean2 - mean2_ref)) < 3e-2)

    print("KERNEL_OK")
</pallas_src>

<mosaic_0001>
module attributes {stable_mosaic.version = 11 : i64} {
  func.func @actorlog_kernel(%arg0: i32, %arg1: memref<8x32xf32, #tpu.memory_space<vmem>>, %arg2: memref<32x32xbf16, #tpu.memory_space<vmem>>, %arg3: memref<32x32xbf16, #tpu.memory_space<vmem>>, %arg4: memref<32x32xbf16, #tpu.memory_space<vmem>>, %arg5: memref<32x128xbf16, #tpu.memory_space<vmem>>, %arg6: memref<8x128xf32, #tpu.memory_space<vmem>>, %arg7: memref<8x128xbf16, #tpu.memory_space<vmem>>) attributes {dimension_semantics = [#tpu.dimension_semantics<parallel>], iteration_bounds = array<i64: 1>, scalar_prefetch = 0 : i64, scratch_operands = 0 : i64, tpu.core_type = #tpu.core_type<tc>, window_params = [{transform_indices = @transform_0, window_bounds = array<i64: 8, 32>}, {pipeline_mode = #tpu.pipeline_mode<synchronous>, transform_indices = @transform_1, window_bounds = array<i64: 32, 32>}, {pipeline_mode = #tpu.pipeline_mode<synchronous>, transform_indices = @transform_2, window_bounds = array<i64: 32, 32>}, {pipeline_mode = #tpu.pipeline_mode<synchronous>, transform_indices = @transform_3, window_bounds = array<i64: 32, 32>}, {pipeline_mode = #tpu.pipeline_mode<synchronous>, transform_indices = @transform_4, window_bounds = array<i64: 32, 128>}, {pipeline_mode = #tpu.pipeline_mode<synchronous>, transform_indices = @transform_5, window_bounds = array<i64: 8, 128>}, {transform_indices = @transform_6, window_bounds = array<i64: 8, 128>}]} {
    %c0 = arith.constant 0 : index
    %c0_0 = arith.constant 0 : index
    %0 = vector.load %arg1[%c0, %c0_0] : memref<8x32xf32, #tpu.memory_space<vmem>>, vector<8x32xf32>
    %1 = arith.truncf %0 : vector<8x32xf32> to vector<8x32xbf16>
    %c0_1 = arith.constant 0 : index
    %c0_2 = arith.constant 0 : index
    %2 = vector.load %arg6[%c0_1, %c0_2] : memref<8x128xf32, #tpu.memory_space<vmem>>, vector<1x32xf32>
    %c1 = arith.constant 1 : index
    %c0_3 = arith.constant 0 : index
    %3 = vector.load %arg6[%c1, %c0_3] : memref<8x128xf32, #tpu.memory_space<vmem>>, vector<1x32xf32>
    %c2 = arith.constant 2 : index
    %c0_4 = arith.constant 0 : index
    %4 = vector.load %arg6[%c2, %c0_4] : memref<8x128xf32, #tpu.memory_space<vmem>>, vector<1x32xf32>
    %c3 = arith.constant 3 : index
    %c0_5 = arith.constant 0 : index
    %5 = vector.load %arg6[%c3, %c0_5] : memref<8x128xf32, #tpu.memory_space<vmem>>, vector<1x32xf32>
    %c4 = arith.constant 4 : index
    %c0_6 = arith.constant 0 : index
    %6 = vector.load %arg6[%c4, %c0_6] : memref<8x128xf32, #tpu.memory_space<vmem>>, vector<1x32xf32>
    %c5 = arith.constant 5 : index
    %c0_7 = arith.constant 0 : index
    %7 = vector.load %arg6[%c5, %c0_7] : memref<8x128xf32, #tpu.memory_space<vmem>>, vector<1x128xf32>
    %c0_8 = arith.constant 0 : index
    %c0_9 = arith.constant 0 : index
    %8 = vector.load %arg2[%c0_8, %c0_9] : memref<32x32xbf16, #tpu.memory_space<vmem>>, vector<32x32xbf16>
    %cst = arith.constant dense<0.000000e+00> : vector<8x32xf32>
    %9 = tpu.matmul %1, %8, %cst {dimension_numbers = #tpu.dot_dimension_numbers<[1], [0], [0], [1], [0, 0, 1, 1], [], []>} : vector<8x32xbf16>, vector<32x32xbf16>, vector<8x32xf32> -> vector<8x32xf32>
    %10 = vector.broadcast %2 : vector<1x32xf32> to vector<8x32xf32>
    %11 = arith.addf %9, %10 : vector<8x32xf32>
    %cst_10 = arith.constant dense<0.000000e+00> : vector<8xf32>
    %12 = vector.multi_reduction <add>, %11, %cst_10 [1] : vector<8x32xf32> to vector<8xf32>
    %13 = vector.shape_cast %12 : vector<8xf32> to vector<8x1xf32>
    %cst_11 = arith.constant 3.200000e+01 : f32
    %14 = vector.broadcast %cst_11 : f32 to vector<8x1xf32>
    %15 = arith.divf %13, %14 : vector<8x1xf32>
    %16 = vector.broadcast %15 : vector<8x1xf32> to vector<8x32xf32>
    %17 = arith.subf %11, %16 : vector<8x32xf32>
    %18 = arith.mulf %17, %17 : vector<8x32xf32>
    %cst_12 = arith.constant dense<0.000000e+00> : vector<8xf32>
    %19 = vector.multi_reduction <add>, %18, %cst_12 [1] : vector<8x32xf32> to vector<8xf32>
    %20 = vector.shape_cast %19 : vector<8xf32> to vector<8x1xf32>
    %cst_13 = arith.constant 3.200000e+01 : f32
    %21 = vector.broadcast %cst_13 : f32 to vector<8x1xf32>
    %22 = arith.divf %20, %21 : vector<8x1xf32>
    %23 = vector.broadcast %15 : vector<8x1xf32> to vector<8x32xf32>
    %24 = arith.subf %11, %23 : vector<8x32xf32>
    %cst_14 = arith.constant 9.99999974E-6 : f32
    %25 = vector.broadcast %cst_14 : f32 to vector<8x1xf32>
    %26 = arith.addf %22, %25 : vector<8x1xf32>
    %27 = math.rsqrt %26 : vector<8x1xf32>
    %28 = vector.broadcast %27 : vector<8x1xf32> to vector<8x32xf32>
    %29 = arith.mulf %24, %28 : vector<8x32xf32>
    %30 = vector.broadcast %3 : vector<1x32xf32> to vector<8x32xf32>
    %31 = arith.mulf %29, %30 : vector<8x32xf32>
    %32 = vector.broadcast %4 : vector<1x32xf32> to vector<8x32xf32>
    %33 = arith.addf %31, %32 : vector<8x32xf32>
    %cst_15 = arith.constant 0.000000e+00 : f32
    %34 = vector.broadcast %cst_15 : f32 to vector<8x32xf32>
    %35 = arith.maximumf %33, %34 : vector<8x32xf32>
    %36 = arith.truncf %35 : vector<8x32xf32> to vector<8x32xbf16>
    %c0_16 = arith.constant 0 : index
    %c0_17 = arith.constant 0 : index
    %37 = vector.load %arg3[%c0_16, %c0_17] : memref<32x32xbf16, #tpu.memory_space<vmem>>, vector<32x32xbf16>
    %cst_18 = arith.constant dense<0.000000e+00> : vector<8x32xf32>
    %38 = tpu.matmul %36, %37, %cst_18 {dimension_numbers = #tpu.dot_dimension_numbers<[1], [0], [0], [1], [0, 0, 1, 1], [], []>} : vector<8x32xbf16>, vector<32x32xbf16>, vector<8x32xf32> -> vector<8x32xf32>
    %39 = vector.broadcast %5 : vector<1x32xf32> to vector<8x32xf32>
    %40 = arith.addf %38, %39 : vector<8x32xf32>
    %cst_19 = arith.constant 0.000000e+00 : f32
    %41 = vector.broadcast %cst_19 : f32 to vector<8x32xf32>
    %42 = arith.maximumf %40, %41 : vector<8x32xf32>
    %43 = arith.truncf %42 : vector<8x32xf32> to vector<8x32xbf16>
    %c0_20 = arith.constant 0 : index
    %c0_21 = arith.constant 0 : index
    %44 = vector.load %arg4[%c0_20, %c0_21] : memref<32x32xbf16, #tpu.memory_space<vmem>>, vector<32x32xbf16>
    %cst_22 = arith.constant dense<0.000000e+00> : vector<8x32xf32>
    %45 = tpu.matmul %43, %44, %cst_22 {dimension_numbers = #tpu.dot_dimension_numbers<[1], [0], [0], [1], [0, 0, 1, 1], [], []>} : vector<8x32xbf16>, vector<32x32xbf16>, vector<8x32xf32> -> vector<8x32xf32>
    %46 = vector.broadcast %6 : vector<1x32xf32> to vector<8x32xf32>
    %47 = arith.addf %45, %46 : vector<8x32xf32>
    %cst_23 = arith.constant 0.000000e+00 : f32
    %48 = vector.broadcast %cst_23 : f32 to vector<8x32xf32>
    %49 = arith.maximumf %47, %48 : vector<8x32xf32>
    %50 = arith.truncf %49 : vector<8x32xf32> to vector<8x32xbf16>
    %c0_24 = arith.constant 0 : index
    %c0_25 = arith.constant 0 : index
    %51 = vector.load %arg5[%c0_24, %c0_25] : memref<32x128xbf16, #tpu.memory_space<vmem>>, vector<32x128xbf16>
    %cst_26 = arith.constant dense<0.000000e+00> : vector<8x128xf32>
    %52 = tpu.matmul %50, %51, %cst_26 {dimension_numbers = #tpu.dot_dimension_numbers<[1], [0], [0], [1], [0, 0, 1, 1], [], []>} : vector<8x32xbf16>, vector<32x128xbf16>, vector<8x128xf32> -> vector<8x128xf32>
    %53 = vector.broadcast %7 : vector<1x128xf32> to vector<8x128xf32>
    %54 = arith.addf %52, %53 : vector<8x128xf32>
    %55 = math.tanh %54 : vector<8x128xf32>
    %56 = arith.truncf %55 : vector<8x128xf32> to vector<8x128xbf16>
    %c0_27 = arith.constant 0 : index
    %c0_28 = arith.constant 0 : index
    %57 = vector.load %arg7[%c0_27, %c0_28] : memref<8x128xbf16, #tpu.memory_space<vmem>>, vector<8x128xbf16>
    tpu.vector_store %arg7[%c0_27, %c0_28], %56 {strides = array<i32>} : memref<8x128xbf16, #tpu.memory_space<vmem>>, vector<8x128xbf16>,
    return
  }
  func.func @transform_0(%arg0: i32) -> (i32, i32) {
    %c0_i32 = arith.constant 0 : i32
    %c0_i32_0 = arith.constant 0 : i32
    return %arg0, %c0_i32 : i32, i32
  }
  func.func @transform_1(%arg0: i32) -> (i32, i32) {
    %c0_i32 = arith.constant 0 : i32
    %c0_i32_0 = arith.constant 0 : i32
    %c0_i32_1 = arith.constant 0 : i32
    return %c0_i32, %c0_i32_0 : i32, i32
  }
  func.func @transform_2(%arg0: i32) -> (i32, i32) {
    %c0_i32 = arith.constant 0 : i32
    %c0_i32_0 = arith.constant 0 : i32
    %c0_i32_1 = arith.constant 0 : i32
    return %c0_i32, %c0_i32_0 : i32, i32
  }
  func.func @transform_3(%arg0: i32) -> (i32, i32) {
    %c0_i32 = arith.constant 0 : i32
    %c0_i32_0 = arith.constant 0 : i32
    %c0_i32_1 = arith.constant 0 : i32
    return %c0_i32, %c0_i32_0 : i32, i32
  }
  func.func @transform_4(%arg0: i32) -> (i32, i32) {
    %c0_i32 = arith.constant 0 : i32
    %c0_i32_0 = arith.constant 0 : i32
    %c0_i32_1 = arith.constant 0 : i32
    return %c0_i32, %c0_i32_0 : i32, i32
  }
  func.func @transform_5(%arg0: i32) -> (i32, i32) {
    %c0_i32 = arith.constant 0 : i32
    %c0_i32_0 = arith.constant 0 : i32
    %c0_i32_1 = arith.constant 0 : i32
    return %c0_i32, %c0_i32_0 : i32, i32
  }
  func.func @transform_6(%arg0: i32) -> (i32, i32) {
    %c0_i32 = arith.constant 0 : i32
    %c0_i32_0 = arith.constant 0 : i32
    return %arg0, %c0_i32 : i32, i32
  }
}

</mosaic_0001>

<bundles_post_ra>
// kernel: tpu_custom_call.1
= control target key start
LH: loop header
LB: loop body
LE: loop exit
PB: predicated region body
PF: predicated region fallthrough
CT: control target
= control target key end

     0   :  { %11 = vsyncpa [#allocation3], 0  ;;  %s646_s0 = inlined_call_operand.hbm [shape: f32[8,32], index: 0, kind: input, shape index: {}]   ;;  %s647_s1 = inlined_call_operand.hbm [shape: bf16[32,32], index: 1, kind: input, shape index: {}]   ;;  %s648_s2 = inlined_call_operand.hbm [shape: bf16[32,32], index: 2, kind: input, shape index: {}]   ;;  %s649_s3 = inlined_call_operand.hbm [shape: bf16[32,32], index: 3, kind: input, shape index: {}]   ;;  %s650_s4 = inlined_call_operand.hbm [shape: bf16[32,128], index: 4, kind: input, shape index: {}]   ;;  %s651_s5 = inlined_call_operand.hbm [shape: f32[8,128], index: 5, kind: input, shape index: {}]   ;;  %s652_s6 = inlined_call_operand.hbm [shape: bf16[8,128], index: 6, kind: output, shape index: {}]  }
   0x1   :  { %12 = vsyncpa [#allocation6], 0 }
   0x2   :  { %13 = vsyncpa [#allocation9], 0 }
   0x3   :  { %14 = vsyncpa [#allocation12], 0  ;;  %s31_s23 = sshll.u32 %s647_s1, 4  ;;  %s32_s23 = int_to_ptr.hbm [resolvable:$true] %s31_s23 }
   0x4   :  { %15 = vsyncpa [#allocation4], 0  ;;  %s562_s24 = smov [#allocation5]   ;;  %s57_s28 = sshll.u32 %s649_s3, 4  ;;  %s58_s28 = int_to_ptr.hbm [resolvable:$true] %s57_s28 }
   0x5   :  { %s33_s25 = sshll.u32 %s562_s24, 4  ;;  %s563_s29 = smov 64   ;;  %s34_s25 = int_to_ptr.vmem [resolvable:$true] %s33_s25 }
   0x6   :  { %s564_s30 = smov 4   ;;  %s565_s7 = smov [#allocation8]  }
   0x7   :  { %39 = dma.hbm_to_vmem [thread:$0]  %s32_s23, 256, %s34_s25, [#allocation6], %s563_s29, %s563_s29, %s564_s30  }
   0x8   :  { %s59_s8 = sshll.u32 %s565_s7, 4  ;;  %s21_s10 = sshll.u32 %s646_s0, 4  ;;  %s60_s8 = int_to_ptr.vmem [resolvable:$true] %s59_s8  ;;  %s22_s10 = int_to_ptr.hbm [resolvable:$true] %s21_s10 }
   0x9   :  { %65 = dma.hbm_to_vmem [thread:$0]  %s58_s28, 256, %s60_s8, [#allocation9], %s563_s29, %s563_s29, %s564_s30  }
   0xa   :  { %s44_s12 = sshll.u32 %s648_s2, 4  ;;  %s566_s13 = smov [#allocation2]   ;;  %s45_s12 = int_to_ptr.hbm [resolvable:$true] %s44_s12 }
   0xb   :  { %s23_s14 = sshll.u32 %s566_s13, 4  ;;  %s567_s15 = smov [#allocation7]   ;;  %s24_s14 = int_to_ptr.vmem [resolvable:$true] %s23_s14 }
   0xc   :  { %26 = dma.hbm_to_vmem [thread:$0]  %s22_s10, 128, %s24_s14, [#allocation3]  }
   0xd   :  { %s46_s16 = sshll.u32 %s567_s15, 4  ;;  %s70_s0 = sshll.u32 %s650_s4, 4  ;;  %s47_s16 = int_to_ptr.vmem [resolvable:$true] %s46_s16  ;;  %s71_s0 = int_to_ptr.hbm [resolvable:$true] %s70_s0 }
   0xe   :  { %52 = dma.hbm_to_vmem [thread:$0]  %s45_s12, 256, %s47_s16, [#allocation6], %s563_s29, %s563_s29, %s564_s30  }
   0xf   :  { %s84_s2 = sshll.u32 %s651_s5, 4  ;;  %s568_s21 = smov [#allocation10]   ;;  %s85_s2 = int_to_ptr.hbm [resolvable:$true] %s84_s2 }
  0x10   :  { %s72_s22 = sshll.u32 %s568_s21, 4  ;;  %s569_s23 = smov [#allocation11]   ;;  %s73_s22 = int_to_ptr.vmem [resolvable:$true] %s72_s22 }
  0x11   :  { %78 = dma.hbm_to_vmem [thread:$0]  %s71_s0, 256, %s73_s22, [#allocation9], %s563_s29, %s563_s29, %s564_s30  }
  0x12   :  { %s86_s4 = sshll.u32 %s569_s23, 4  ;;  %s87_s4 = int_to_ptr.vmem [resolvable:$true] %s86_s4 }
  0x13   :  { %89 = dma.hbm_to_vmem [thread:$0]  %s85_s2, 128, %s87_s4, [#allocation12]  }
  0x14   :  { %552 = dma.done.wait [#allocation3], 128  }
  0x15   :  { %553 = vsyncadd [#allocation3], 4294967168 }
  0x16   :  { %554 = dma.done.wait [#allocation6], 512  }
  0x17   :  { %555 = vsyncadd [#allocation6], 4294966784 }
  0x18   :  { %556 = dma.done.wait [#allocation9], 512  }
  0x19   :  { %557 = vsyncadd [#allocation9], 4294966784 }
  0x1a   :  { %558 = dma.done.wait [#allocation12], 128  }
  0x1b   :  { %559 = vsyncadd [#allocation12], 4294967168  ;;  %v355_v0 = vld [vmem:[#allocation5 + $0x8] sm:$0xff]  ;;  %v354_v1 = vld [vmem:[#allocation5] sm:$0xff]  ;;  %vm140_vm0 = vcmask 261120   ;;  %v570_v9 = vmov 32.0  }
  0x1c   :  { %v115_v2 = vld [vmem:[#allocation2] sm:$0xff]  ;;  %150 = vmatpush.bf16.msra.mxu0 %v355_v0  ;;  %v372_v4 = vld [vmem:[#allocation11] ss:$0 sm:$0xff]  ;;  %378 = vrcp.f32 %v570_v9  ;;  %v356_v22 = vld [vmem:[#allocation7] sm:$0xff]  ;;  %s571_s5 = smov [#allocation13]   ;;  %s305_s27 = sshll.u32 %s652_s6, 4  ;;  %s306_s27 = int_to_ptr.hbm [resolvable:$true] %s305_s27 }
  0x1d   :  { %v116_v3 = vpack.c.bf16 %v115_v2, %v115_v2  ;;  %v357_v21 = vld [vmem:[#allocation7 + $0x8] sm:$0xff]  ;;  %v373_v32 = vld [vmem:[#allocation11 + $0x1] ss:$0 sm:$0xff]  ;;  %v374_v35 = vld [vmem:[#allocation11 + $0x2] ss:$0 sm:$0xff]  ;;  %s303_s24 = sshll.u32 %s571_s5, 4  ;;  %s304_s24 = int_to_ptr.vmem [resolvable:$true] %s303_s24 }
  0x1e   :  { %218 = vmatpush.bf16.msra.mxu1 %v357_v21  ;;  %v359_v40 = vld [vmem:[#allocation8 + $0x8] sm:$0xff]  ;;  %v358_v41 = vld [vmem:[#allocation8] sm:$0xff]  ;;  %v361_v48 = vld [vmem:[#allocation10 + $0x8] sm:$0xff] }
  0x1f   :  { %253 = vmatpush.bf16.msra.mxu2 %v359_v40  ;;  %v375_v42 = vld [vmem:[#allocation11 + $0x3] ss:$0 sm:$0xff]  ;;  %288 = vmatpush.bf16.msra.mxu3 %v361_v48  ;;  %v360_v49 = vld [vmem:[#allocation10] sm:$0xff]  ;;  %v376_v50 = vld [vmem:[#allocation11 + $0x4] ss:$0 sm:$0xff] }
  0x20   :  { %151 = vmatpush.bf16.msra.mxu0 %v354_v1  ;;  %v377_v56 = vld [vmem:[#allocation11 + $0x5] ss:$0 sm:$0xff] }
  0x22   :  { %v379_v10 = vpop.eup %378  ;;  %219 = vmatpush.bf16.msra.mxu1 %v356_v22 }
  0x23   :  { %326 = vmatmul.msk.bf16.vlgmr.msra.gmra.mxu0 %vm140_vm0, %v116_v3  ;;  %v161_v11 = vmul.f32 32.0, %v379_v10  ;;  %vm165_vm1 = vweird.f32 %v379_v10  ;;  %254 = vmatpush.bf16.msra.mxu2 %v358_v41 }
  0x24   :  { %289 = vmatpush.bf16.msra.mxu3 %v360_v49 }
  0x25   :  { %v162_v12 = vsub.f32 1.0, %v161_v11 }
  0x27   :  { %v163_v13 = vmul.f32 %v379_v10, %v162_v12 }
  0x29   :  { %v164_v14 = vadd.f32 %v379_v10, %v163_v13 }
  0x2b   :  { %v166_v15 = vsel %vm165_vm1, %v379_v10, %v164_v14 }
  0xa0   :  { %v153_v5 = vpop.f32.mrf.mxu0 }
  0xa1   :  { %v154_v6 = vadd.f32 %v372_v4, %v153_v5 }
  0xa3   :  { %v157_v7 = vsel %vm140_vm0, %v154_v6, 0.0 }
  0xa4   :  { %158 = vadd.xlane.f32.xlu0 %v157_v7 }
  0xa8   :  { %v155_v8 = vpop.f32.mrf.mxu0 }
 0x117   :  { %v159_v16 = vpop.xlane.xlu0 %158 }
 0x118   :  { %v167_v17 = vmul.f32 %v166_v15, %v159_v16 }
 0x11a   :  { %v168_v18 = vsub.f32 %v154_v6, %v167_v17 }
 0x11c   :  { %v169_v19 = vmul.f32 %v168_v18, %v168_v18 }
 0x11e   :  { %v170_v20 = vsel %vm140_vm0, %v169_v19, 0.0 }
 0x11f   :  { %171 = vadd.xlane.f32.xlu0 %v170_v20 }
 0x192   :  { %v172_v23 = vpop.xlane.xlu0 %171 }
 0x193   :  { %v173_v24 = vmul.f32 %v172_v23, %v166_v15 }
 0x195   :  { %v174_v25 = vadd.f32 1e-05, %v173_v24 }
 0x197   :  { %380 = vrsqrt.f32 %v174_v25  ;;  %vm181_vm3 = vweird.f32 %v174_v25 }
 0x19d   :  { %v381_v26 = vpop.eup %380 }
 0x19e   :  { %v176_v27 = vmul.f32 %v381_v26, %v174_v25  ;;  %vm182_vm2 = vweird.f32 %v381_v26 }
 0x19f   :  { %vm183_vm4 = vmor %vm181_vm3, %vm182_vm2 }
 0x1a0   :  { %v177_v28 = vmul.f32 %v381_v26, %v176_v27 }
 0x1a2   :  { %v178_v29 = vmul.f32 0.5, %v177_v28 }
 0x1a4   :  { %v179_v30 = vsub.f32 1.5, %v178_v29 }
 0x1a6   :  { %v180_v31 = vmul.f32 %v381_v26, %v179_v30 }
 0x1a8   :  { %v184_v33 = vsel %vm183_vm4, %v381_v26, %v180_v31 }
 0x1a9   :  { %v185_v34 = vmul.f32 %v184_v33, %v168_v18 }
 0x1ab   :  { %v187_v36 = vmul.f32 %v373_v32, %v185_v34 }
 0x1ad   :  { %v189_v37 = vadd.f32 %v374_v35, %v187_v36 }
 0x1af   :  { %v190_v38 = vmax.f32 %v189_v37, 0.0 }
 0x1b1   :  { %v191_v39 = vpack.c.bf16 %v190_v38, %v190_v38 }
 0x1b3   :  { %335 = vmatmul.msk.bf16.vlgmr.msra.gmra.mxu1 %vm140_vm0, %v191_v39 }
 0x230   :  { %v221_v43 = vpop.f32.mrf.mxu1 }
 0x231   :  { %v222_v44 = vadd.f32 %v375_v42, %v221_v43 }
 0x233   :  { %v225_v45 = vmax.f32 %v222_v44, 0.0 }
 0x235   :  { %v226_v46 = vpack.c.bf16 %v225_v45, %v225_v45 }
 0x237   :  { %344 = vmatmul.msk.bf16.vlgmr.msra.gmra.mxu2 %vm140_vm0, %v226_v46 }
 0x238   :  { %v223_v47 = vpop.f32.mrf.mxu1 }
 0x2ba   :  { %v256_v51 = vpop.f32.mrf.mxu2 }
 0x2bb   :  { %v257_v52 = vadd.f32 %v376_v50, %v256_v51 }
 0x2bd   :  { %v260_v53 = vmax.f32 %v257_v52, 0.0 }
 0x2bf   :  { %v261_v54 = vpack.c.bf16 %v260_v53, %v260_v53 }
 0x2c1   :  { %353 = vmatmul.msk.bf16.vlgmr.msra.gmra.mxu3 %vm140_vm0, %v261_v54 }
 0x2c2   :  { %v258_v55 = vpop.f32.mrf.mxu2 }
 0x344   :  { %v291_v57 = vpop.f32.mrf.mxu3 }
 0x345   :  { %v292_v58 = vadd.f32 %v377_v56, %v291_v57 }
 0x347   :  { %382 = vtanh.f32 %v292_v58 }
 0x34c   :  { %v293_v59 = vpop.f32.mrf.mxu3 }
 0x34d   :  { %v383_v60 = vpop.eup %382 }
 0x34e   :  { %v296_v61 = vpack.c.bf16 %v383_v60, %v383_v60 }
 0x350   :  { %297 = vst [vmem:[#allocation13] sm:$0xf] %v296_v61 }
 0x351   :  { %308 = dma.vmem_to_hbm [thread:$0]  %s304_s24, 64, %s306_s27, [#allocation4]  }
 0x352   :  { %560 = dma.done.wait [#allocation4], 64  }
 0x353   :  { %561 = vsyncadd [#allocation4], 4294967232 }
 0x354   :  { %313 = vsyncpa [#allocation3], 1 }
 0x355   :  { %314 = vsyncpa [#allocation6], 1 }
 0x356   :  { %315 = vsyncpa [#allocation9], 1 }
 0x357   :  { %316 = vsyncpa [#allocation12], 1 }
 0x358   :  { %317 = vsyncpa [#allocation4], 1 }

</bundles_post_ra>
